<compile_context>
chip_gen: v6e
topology: v6e:2x2x1
jax: 0.10.0
libtpu: 0.0.40
codegen_flags: <defaults>
</compile_context>

<pallas_src>
import functools

import jax
import jax.numpy as jnp
from jax import lax
from jax.experimental import pallas as pl
from jax.experimental.pallas import tpu as pltpu


class Lambda:
    """JAX analogue of the PyTorch Lambda nn.Module: forward(x) = func(x)."""

    def __init__(self, func):
        self.func = func

    def __call__(self, x):
        return self.func(x)


def _cdiv(a, b):
    return (a + b - 1) // b


def _round_up(a, b):
    return _cdiv(a, b) * b


def _round_down(a, b):
    return (a // b) * b


def _vmem_capacity_bytes():
    """Per-TensorCore VMEM capacity; conservative fallback if unavailable."""
    try:
        info = pltpu.get_tpu_info()
        cap = getattr(info, "vmem_capacity_bytes", None)
        if cap:
            return int(cap)
    except Exception:
        pass
    return 64 << 20  # v7x per-TC capacity (the smallest of v5e/v6e/v7x)


def _gap_small_hw_kernel(x_ref, o_ref, *, inv_hw):
    """One spatial step per row block (hw <= 1024).

    x_ref: (TR, HW) input tile, o_ref: (TR, 1) output tile.
    The compiler sums the hw vregs with VPU adds and issues one XLU
    cross-lane reduce per (8,128) row group; sum-then-single-divide.
    """
    o_ref[...] = (
        jnp.sum(x_ref[...].astype(jnp.float32), axis=-1, keepdims=True) * inv_hw
    ).astype(o_ref.dtype)


def _gap_large_hw_kernel(x_ref, o_ref, acc_ref, *, inv_hw, hw, thw, chunks,
                         mask_tail):
    """Spatially tiled path (hw > 1024) with a lane-wise f32 accumulator.

    x_ref  : (TR, THW) input tile
    o_ref  : (TR, 1)   output tile (written on the last hw step)
    acc_ref: (TR, 128) f32 accumulator scratch, persists across hw steps
    """
    k = pl.program_id(1)

    @pl.when(k == 0)
    def _init():
        acc_ref[...] = jnp.zeros_like(acc_ref)

    # Hot loop stays on the VPU (4 VALU slots): add 128-lane chunks into the
    # 128-wide accumulator; no per-step XLU cross-lane reduce.
    for j in range(chunks):
        xb = x_ref[:, j * 128:(j + 1) * 128].astype(jnp.float32)
        if mask_tail:
            lane = lax.broadcasted_iota(jnp.int32, xb.shape, 1)
            xb = jnp.where(k * thw + j * 128 + lane < hw, xb, 0.0)
        acc_ref[...] += xb

    @pl.when(k == pl.num_programs(1) - 1)
    def _finalize():
        # Single XLU cross-lane reduce + single multiply by 1/hw at the end.
        o_ref[...] = (
            jnp.sum(acc_ref[...], axis=-1, keepdims=True) * inv_hw
        ).astype(o_ref.dtype)


def global_avg_pool_nchw(x):
    """Global average pooling over (H, W) of an NCHW tensor via Pallas.

    x: (N, C, H, W) -> (N, C), same dtype as the input.
    """
    n, c, h, w = x.shape
    rows = n * c
    hw = h * w
    x2d = x.reshape(rows, hw)

    itemsize = jnp.dtype(x.dtype).itemsize
    sublane = {4: 8, 2: 16, 1: 32}.get(itemsize, 8)

    vmem_cap = _vmem_capacity_bytes()
    block_budget = min(8 << 20, vmem_cap // 16)   # 8 MiB v5e/v6e, 4 MiB v7x
    vmem_limit = min(64 << 20, vmem_cap // 2)     # 64 MiB v5e/v6e, 32 MiB v7x

    inv_hw = float(1.0 / hw)
    itemcost = rows * hw * itemsize + rows * itemsize

    def _cap_for_megacore(tr):
        # Guarantee >= 2 blocks along the parallel (rows) axis on v7x whenever
        # there are enough rows; free on single-TC chips.
        if rows > 2 * sublane:
            tr = min(tr, max(sublane, _round_down(_cdiv(rows, 2), sublane)))
        return tr

    if hw <= 1024:
        # --- ProDet hot path: small spatial extent, rows tiled by byte budget.
        thw = hw                                               # full extent
        bytes_per_row = max(_round_up(hw, 128), 128) * itemsize  # lane padding
        if rows <= sublane:
            tr = rows                                          # full extent
        else:
            tr = max(sublane,
                     _round_down(block_budget // bytes_per_row, sublane))
            tr = _cap_for_megacore(tr)
            tr = min(tr, _round_up(rows, sublane))
        grid = (_cdiv(rows, tr),)

        out = pl.pallas_call(
            functools.partial(_gap_small_hw_kernel, inv_hw=inv_hw),
            out_shape=jax.ShapeDtypeStruct((rows, 1), x.dtype),
            grid_spec=pltpu.PrefetchScalarGridSpec(
                num_scalar_prefetch=0,
                grid=grid,
                in_specs=[pl.BlockSpec((tr, thw), lambda i: (i, 0))],
                out_specs=pl.BlockSpec((tr, 1), lambda i: (i, 0)),
            ),
            compiler_params=pltpu.CompilerParams(
                dimension_semantics=("parallel",),
                vmem_limit_bytes=vmem_limit,
            ),
            cost_estimate=pl.CostEstimate(
                flops=rows * hw, transcendentals=0, bytes_accessed=itemcost),
        )(x2d)
    else:
        # --- Large spatial extent: tile hw, lane-wise f32 accumulation.
        if rows <= sublane:
            tr = rows
        else:
            tr = min(_round_up(rows, sublane), max(sublane, 256))
            tr = _cap_for_megacore(tr)
        max_thw = _round_down(max(block_budget // max(1, tr * itemsize), 128),
                              128)
        thw = max(128, min(max_thw, _round_up(hw, 128), 64 * 128))
        chunks = thw // 128
        mask_tail = (hw % thw) != 0
        grid = (_cdiv(rows, tr), _cdiv(hw, thw))

        kernel = functools.partial(
            _gap_large_hw_kernel, inv_hw=inv_hw, hw=hw, thw=thw,
            chunks=chunks, mask_tail=mask_tail)

        out = pl.pallas_call(
            kernel,
            out_shape=jax.ShapeDtypeStruct((rows, 1), x.dtype),
            grid_spec=pltpu.PrefetchScalarGridSpec(
                num_scalar_prefetch=0,
                grid=grid,
                in_specs=[pl.BlockSpec((tr, thw), lambda i, k: (i, k))],
                out_specs=pl.BlockSpec((tr, 1), lambda i, k: (i, 0)),
                scratch_shapes=[pltpu.VMEM((tr, 128), jnp.float32)],
            ),
            compiler_params=pltpu.CompilerParams(
                dimension_semantics=("parallel", "arbitrary"),
                vmem_limit_bytes=vmem_limit,
            ),
            cost_estimate=pl.CostEstimate(
                flops=rows * hw, transcendentals=0, bytes_accessed=itemcost),
        )(x2d)

    return out.reshape(n, c)


if __name__ == "__main__":
    key = jax.random.PRNGKey(0)

    # Lambda wrapping the Pallas-backed global average pooling, as ProDet does
    # with F.adaptive_avg_pool2d(x, 1).flatten(1).
    pool = Lambda(global_avg_pool_nchw)

    # Primary small-shape check (NCHW feature map).
    N, C, H, W = 2, 4, 16, 16
    x = jax.random.normal(key, (N, C, H, W), dtype=jnp.float32)
    y = jax.block_until_ready(pool(x))
    ref = jnp.mean(x, axis=(2, 3))
    assert y.shape == (N, C), y.shape
    assert jnp.allclose(y, ref, atol=1e-5, rtol=1e-5), "mismatch (16x16)"

    # ProDet-like small spatial extent with a row tail (exercises byte-budget
    # row tiling and clipped boundary blocks).
    x2 = jax.random.normal(jax.random.PRNGKey(1), (3, 20, 7, 7),
                           dtype=jnp.float32)
    y2 = jax.block_until_ready(pool(x2))
    assert jnp.allclose(y2, jnp.mean(x2, axis=(2, 3)),
                        atol=1e-5, rtol=1e-5), "mismatch (7x7)"

    # Large spatial extent (exercises the tiled-hw accumulator path + mask).
    x3 = jax.random.normal(jax.random.PRNGKey(2), (1, 2, 40, 40),
                           dtype=jnp.float32)
    y3 = jax.block_until_ready(pool(x3))
    assert jnp.allclose(y3, jnp.mean(x3, axis=(2, 3)),
                        atol=1e-5, rtol=1e-5), "mismatch (40x40)"

    print("KERNEL_OK")
</pallas_src>

<mosaic_0001>
module attributes {stable_mosaic.version = 11 : i64} {
  func.func @_gap_small_hw_kernel(%arg0: i32, %arg1: memref<8x256xf32, #tpu.memory_space<vmem>>, %arg2: memref<8x1xf32, #tpu.memory_space<vmem>>) attributes {dimension_semantics = [#tpu.dimension_semantics<parallel>], iteration_bounds = array<i64: 1>, scalar_prefetch = 0 : i64, scratch_operands = 0 : i64, tpu.core_type = #tpu.core_type<tc>, window_params = [{transform_indices = @transform_0, window_bounds = array<i64: 8, 256>}, {transform_indices = @transform_1, window_bounds = array<i64: 8, 1>}]} {
    %c0 = arith.constant 0 : index
    %c0_0 = arith.constant 0 : index
    %0 = vector.load %arg1[%c0, %c0_0] : memref<8x256xf32, #tpu.memory_space<vmem>>, vector<8x256xf32>
    %cst = arith.constant dense<0.000000e+00> : vector<8xf32>
    %1 = vector.multi_reduction <add>, %0, %cst [1] : vector<8x256xf32> to vector<8xf32>
    %2 = vector.shape_cast %1 : vector<8xf32> to vector<8x1xf32>
    %cst_1 = arith.constant 3.906250e-03 : f32
    %3 = vector.broadcast %cst_1 : f32 to vector<8x1xf32>
    %4 = arith.mulf %2, %3 : vector<8x1xf32>
    %c0_2 = arith.constant 0 : index
    %c0_3 = arith.constant 0 : index
    %5 = vector.load %arg2[%c0_2, %c0_3] : memref<8x1xf32, #tpu.memory_space<vmem>>, vector<8x1xf32>
    tpu.vector_store %arg2[%c0_2, %c0_3], %4 {strides = array<i32>} : memref<8x1xf32, #tpu.memory_space<vmem>>, vector<8x1xf32>,
    return
  }
  func.func @transform_0(%arg0: i32) -> (i32, i32) {
    %c0_i32 = arith.constant 0 : i32
    %c0_i32_0 = arith.constant 0 : i32
    return %arg0, %c0_i32 : i32, i32
  }
  func.func @transform_1(%arg0: i32) -> (i32, i32) {
    %c0_i32 = arith.constant 0 : i32
    %c0_i32_0 = arith.constant 0 : i32
    return %arg0, %c0_i32 : i32, i32
  }
}

</mosaic_0001>

<bundles_post_ra>
// kernel: tpu_custom_call.1
= control target key start
LH: loop header
LB: loop body
LE: loop exit
PB: predicated region body
PF: predicated region fallthrough
CT: control target
= control target key end

     0   :  { %6 = vsyncpa [#allocation3], 0  ;;  %s56_s6 = smov [#allocation2]   ;;  %s73_s0 = inlined_call_operand.hbm [shape: f32[8,256], index: 0, kind: input, shape index: {}]   ;;  %s74_s1 = inlined_call_operand.vmem [shape: f32[8,1], index: 1, kind: output, shape index: {}]  }
   0x1   :  { %s13_s7 = sshll.u32 %s56_s6, 4  ;;  %s14_s7 = int_to_ptr.vmem [resolvable:$true] %s13_s7 }
   0x2   :  { %s42_s8 = scalar_lea.vmem %s14_s7, 256  ;;  %p47_p1 = scmp.lt.s32.totalorder %s14_s7, %s14_s7 }
   0x3   :  { %p43_p0 = scmp.ne.s32.totalorder %s14_s7, %s42_s8  ;;  %p48_p2 = scmp.lt.s32.totalorder %s42_s8, %s42_s8 }
   0x5   :  { %p49_p3 = por %p48_p2, %p47_p1 }
   0x7   :  { %p50_p4 = pnand %p49_p3, %p43_p0 }
   0x9   :  { %53 = shalt.err (!%p50_p4)
}
   0xa   :  { %16 = dma.hbm_to_vmem [thread:$0]  %s73_s0, 256, %s14_s7, [#allocation3]  }
   0xb   :  { %54 = dma.done.wait [#allocation3], 256  }
   0xc   :  { %55 = vsyncadd [#allocation3], 4294967040  ;;  %v20_v0 = vld [vmem:[#allocation2] sm:$0xff]  ;;  %v21_v1 = vld [vmem:[#allocation2 + $0x8] sm:$0xff]  ;;  %vm26_vm0 = vcmask 7168  }
   0xd   :  { %v22_v2 = vadd.f32 %v21_v1, %v20_v0 }
   0xf   :  { %23 = vadd.xlane.f32.xlu0 %v22_v2 }
  0x98   :  { %v24_v3 = vpop.xlane.xlu0 %23 }
  0x99   :  { %v25_v4 = vmul.f32 0.00390625, %v24_v3 }
  0x9b   :  { %27 = vst.msk [vmem:[%s74_s1] sm:$0xff] %vm26_vm0, %v25_v4 }
  0x9c   :  { %32 = vsyncpa [#allocation3], 1 }

</bundles_post_ra>
